<compile_context>
chip_gen: v7x
topology: tpu7x:2x2x1
jax: 0.10.0
libtpu: 0.0.40
codegen_flags: <defaults>
</compile_context>

<pallas_src>
from functools import partial

import jax
import jax.numpy as jnp
from jax.experimental import pallas as pl
from jax.experimental.pallas import tpu as pltpu

LANE = 128


def _round_up(x, m):
    return (x + m - 1) // m * m


def actor_kernel(state_ref, w1_ref, b1_ref, w2_ref, b2_ref, wpi_ref, bpi_ref,
                 pi_ref, *, n_actions):
    # fc1 + relu  (bf16 MXU operands, f32 accumulation; bias add in f32)
    x = state_ref[...].astype(jnp.bfloat16)
    h = jnp.dot(x, w1_ref[...], preferred_element_type=jnp.float32)
    h = jnp.maximum(h + b1_ref[...], 0.0)

    # fc2 + relu
    h = jnp.dot(h.astype(jnp.bfloat16), w2_ref[...],
                preferred_element_type=jnp.float32)
    h = jnp.maximum(h + b2_ref[...], 0.0)

    # pi head: lane-dense (128-wide) matmul, then drop the zero-padded action
    # lanes before the softmax (no -inf masking needed).
    logits = jnp.dot(h.astype(jnp.bfloat16), wpi_ref[...],
                     preferred_element_type=jnp.float32) + bpi_ref[...]
    logits = logits[:, :n_actions]

    # numerically stable softmax over last axis (== torch dim=1); exact f32
    # division so each row is an exact simplex (approx reciprocal was not).
    m = jnp.max(logits, axis=-1, keepdims=True)
    e = jnp.exp(logits - m)
    denom = jnp.sum(e, axis=-1, keepdims=True)
    pi_ref[...] = (e / denom).astype(pi_ref.dtype)


def prepare_actor_params(w1, b1, w2, b2, wpi, bpi):
    """One-time prep: transpose to (in,out), cast weights to bf16, pad to 128 lanes.

    PyTorch convention in: w* are (out, in), b* are (out,). Biases stay f32.
    """
    fc1_dims, input_dims = w1.shape
    fc2_dims = w2.shape[0]
    n_actions = wpi.shape[0]

    h1p = _round_up(fc1_dims, LANE)
    h2p = _round_up(fc2_dims, LANE)
    nap = _round_up(n_actions, LANE)

    def pad_wt(w, rows, cols):
        wt = w.T.astype(jnp.bfloat16)          # (in, out)
        return jnp.pad(wt, ((0, rows - wt.shape[0]), (0, cols - wt.shape[1])))

    def pad_b(b, cols):
        br = b.reshape(1, -1).astype(jnp.float32)
        return jnp.pad(br, ((0, 0), (0, cols - br.shape[1])))

    w1_p = pad_wt(w1, input_dims, h1p)
    b1_p = pad_b(b1, h1p)
    w2_p = pad_wt(w2, h1p, h2p)                # padded fc1 rows are zero
    b2_p = pad_b(b2, h2p)
    wpi_p = pad_wt(wpi, h2p, nap)              # padded action columns are zero
    bpi_p = pad_b(bpi, nap)
    return (w1_p, b1_p, w2_p, b2_p, wpi_p, bpi_p), n_actions


@partial(jax.jit, static_argnames=("n_actions", "block_b"))
def actor_forward(state, params, n_actions, block_b=1024):
    """state: (B, input_dims) f32; params from prepare_actor_params."""
    w1_p, b1_p, w2_p, b2_p, wpi_p, bpi_p = params
    B, input_dims = state.shape

    # Batch tiling:
    #  * B <= 256: single tile (launch/DMA-latency bound anyway).
    #  * B  > 256: >= 2 grid steps (both v7x TensorCores), tiles multiples of
    #    256 rows to fill the MXU M dimension and amortize ~0.35us/step.
    # VMEM is nowhere near binding (a few MB/tile vs 32+ MiB scoped budget).
    if B <= 256:
        tb = B
    else:
        tb = min(block_b, _round_up(pl.cdiv(B, 2), 256))
    grid = (pl.cdiv(B, tb),)

    pinned = lambda shape: pl.BlockSpec(shape, lambda i: (0, 0))

    return pl.pallas_call(
        partial(actor_kernel, n_actions=n_actions),
        out_shape=jax.ShapeDtypeStruct((B, n_actions), jnp.float32),
        grid=grid,
        in_specs=[
            pl.BlockSpec((tb, input_dims), lambda i: (i, 0)),   # state tile
            pinned(w1_p.shape), pinned(b1_p.shape),             # VMEM-resident
            pinned(w2_p.shape), pinned(b2_p.shape),
            pinned(wpi_p.shape), pinned(bpi_p.shape),
        ],
        # Narrow output: write (tb, n_actions) directly, no padded writeback
        # and no post-call slice.
        out_specs=pl.BlockSpec((tb, n_actions), lambda i: (i, 0)),
        compiler_params=pltpu.CompilerParams(
            dimension_semantics=("parallel",)),
    )(state, w1_p, b1_p, w2_p, b2_p, wpi_p, bpi_p)


def init_linear(key, out_dim, in_dim):
    """Deterministic PyTorch-style (out, in) Linear init: U(-1/sqrt(in), 1/sqrt(in))."""
    kw, kb = jax.random.split(key)
    bound = 1.0 / jnp.sqrt(jnp.float32(in_dim))
    w = jax.random.uniform(kw, (out_dim, in_dim), jnp.float32, -bound, bound)
    b = jax.random.uniform(kb, (out_dim,), jnp.float32, -bound, bound)
    return w, b


def reference_forward_f32(state, w1, b1, w2, b2, wpi, bpi):
    x = jnp.maximum(state @ w1.T + b1, 0.0)
    x = jnp.maximum(x @ w2.T + b2, 0.0)
    return jax.nn.softmax(x @ wpi.T + bpi, axis=1)


def reference_forward_bf16(state, w1, b1, w2, b2, wpi, bpi):
    bf = jnp.bfloat16
    x = jnp.dot(state.astype(bf), w1.T.astype(bf),
                preferred_element_type=jnp.float32) + b1
    x = jnp.maximum(x, 0.0)
    x = jnp.dot(x.astype(bf), w2.T.astype(bf),
                preferred_element_type=jnp.float32) + b2
    x = jnp.maximum(x, 0.0)
    logits = jnp.dot(x.astype(bf), wpi.T.astype(bf),
                     preferred_element_type=jnp.float32) + bpi
    return jax.nn.softmax(logits, axis=1)


if __name__ == "__main__":
    # Shapes consistent with the module constructor:
    # input_dims=16, fc1_dims=64, fc2_dims=64, n_actions=8, batch=8
    B, input_dims, fc1_dims, fc2_dims, n_actions = 8, 16, 64, 64, 8

    root = jax.random.PRNGKey(0)
    k_state, k1, k2, k3 = jax.random.split(root, 4)

    state = jax.random.normal(k_state, (B, input_dims), jnp.float32)
    w1, b1 = init_linear(k1, fc1_dims, input_dims)
    w2, b2 = init_linear(k2, fc2_dims, fc1_dims)
    wpi, bpi = init_linear(k3, n_actions, fc2_dims)

    # one-time parameter prep (layout + dtype), then per-call forward
    params, na = prepare_actor_params(w1, b1, w2, b2, wpi, bpi)
    pi = actor_forward(state, params, n_actions=na)
    pi = jax.block_until_ready(pi)

    ref16 = reference_forward_bf16(state, w1, b1, w2, b2, wpi, bpi)
    ref32 = reference_forward_f32(state, w1, b1, w2, b2, wpi, bpi)

    assert pi.shape == (B, n_actions)
    assert bool(jnp.allclose(jnp.sum(pi, axis=1), 1.0, atol=1e-4))  # exact simplex
    assert bool(jnp.allclose(pi, ref16, atol=2e-3, rtol=2e-3))      # matches bf16-MXU math
    assert bool(jnp.allclose(pi, ref32, atol=2e-2))                 # close to full-f32 math

    print("KERNEL_OK")
</pallas_src>

<mosaic_0001>
module attributes {stable_mosaic.version = 11 : i64} {
  func.func @actor_kernel(%arg0: i32, %arg1: memref<8x16xf32, #tpu.memory_space<vmem>>, %arg2: memref<16x128xbf16, #tpu.memory_space<vmem>>, %arg3: memref<1x128xf32, #tpu.memory_space<vmem>>, %arg4: memref<128x128xbf16, #tpu.memory_space<vmem>>, %arg5: memref<1x128xf32, #tpu.memory_space<vmem>>, %arg6: memref<128x128xbf16, #tpu.memory_space<vmem>>, %arg7: memref<1x128xf32, #tpu.memory_space<vmem>>, %arg8: memref<8x8xf32, #tpu.memory_space<vmem>>) attributes {dimension_semantics = [#tpu.dimension_semantics<parallel>], iteration_bounds = array<i64: 1>, scalar_prefetch = 0 : i64, scratch_operands = 0 : i64, tpu.core_type = #tpu.core_type<tc>, window_params = [{transform_indices = @transform_0, window_bounds = array<i64: 8, 16>}, {pipeline_mode = #tpu.pipeline_mode<synchronous>, transform_indices = @transform_1, window_bounds = array<i64: 16, 128>}, {pipeline_mode = #tpu.pipeline_mode<synchronous>, transform_indices = @transform_2, window_bounds = array<i64: 1, 128>}, {pipeline_mode = #tpu.pipeline_mode<synchronous>, transform_indices = @transform_3, window_bounds = array<i64: 128, 128>}, {pipeline_mode = #tpu.pipeline_mode<synchronous>, transform_indices = @transform_4, window_bounds = array<i64: 1, 128>}, {pipeline_mode = #tpu.pipeline_mode<synchronous>, transform_indices = @transform_5, window_bounds = array<i64: 128, 128>}, {pipeline_mode = #tpu.pipeline_mode<synchronous>, transform_indices = @transform_6, window_bounds = array<i64: 1, 128>}, {transform_indices = @transform_7, window_bounds = array<i64: 8, 8>}]} {
    %c0 = arith.constant 0 : index
    %c0_0 = arith.constant 0 : index
    %0 = vector.load %arg1[%c0, %c0_0] : memref<8x16xf32, #tpu.memory_space<vmem>>, vector<8x16xf32>
    %1 = arith.truncf %0 : vector<8x16xf32> to vector<8x16xbf16>
    %c0_1 = arith.constant 0 : index
    %c0_2 = arith.constant 0 : index
    %2 = vector.load %arg2[%c0_1, %c0_2] : memref<16x128xbf16, #tpu.memory_space<vmem>>, vector<16x128xbf16>
    %cst = arith.constant dense<0.000000e+00> : vector<8x128xf32>
    %3 = tpu.matmul %1, %2, %cst {dimension_numbers = #tpu.dot_dimension_numbers<[1], [0], [0], [1], [0, 0, 1, 1], [], []>} : vector<8x16xbf16>, vector<16x128xbf16>, vector<8x128xf32> -> vector<8x128xf32>
    %c0_3 = arith.constant 0 : index
    %c0_4 = arith.constant 0 : index
    %4 = vector.load %arg3[%c0_3, %c0_4] : memref<1x128xf32, #tpu.memory_space<vmem>>, vector<1x128xf32>
    %5 = vector.broadcast %4 : vector<1x128xf32> to vector<8x128xf32>
    %6 = arith.addf %3, %5 : vector<8x128xf32>
    %cst_5 = arith.constant 0.000000e+00 : f32
    %7 = vector.broadcast %cst_5 : f32 to vector<8x128xf32>
    %8 = arith.maximumf %6, %7 : vector<8x128xf32>
    %9 = arith.truncf %8 : vector<8x128xf32> to vector<8x128xbf16>
    %c0_6 = arith.constant 0 : index
    %c0_7 = arith.constant 0 : index
    %10 = vector.load %arg4[%c0_6, %c0_7] : memref<128x128xbf16, #tpu.memory_space<vmem>>, vector<128x128xbf16>
    %cst_8 = arith.constant dense<0.000000e+00> : vector<8x128xf32>
    %11 = tpu.matmul %9, %10, %cst_8 {dimension_numbers = #tpu.dot_dimension_numbers<[1], [0], [0], [1], [0, 0, 1, 1], [], []>} : vector<8x128xbf16>, vector<128x128xbf16>, vector<8x128xf32> -> vector<8x128xf32>
    %c0_9 = arith.constant 0 : index
    %c0_10 = arith.constant 0 : index
    %12 = vector.load %arg5[%c0_9, %c0_10] : memref<1x128xf32, #tpu.memory_space<vmem>>, vector<1x128xf32>
    %13 = vector.broadcast %12 : vector<1x128xf32> to vector<8x128xf32>
    %14 = arith.addf %11, %13 : vector<8x128xf32>
    %cst_11 = arith.constant 0.000000e+00 : f32
    %15 = vector.broadcast %cst_11 : f32 to vector<8x128xf32>
    %16 = arith.maximumf %14, %15 : vector<8x128xf32>
    %17 = arith.truncf %16 : vector<8x128xf32> to vector<8x128xbf16>
    %c0_12 = arith.constant 0 : index
    %c0_13 = arith.constant 0 : index
    %18 = vector.load %arg6[%c0_12, %c0_13] : memref<128x128xbf16, #tpu.memory_space<vmem>>, vector<128x128xbf16>
    %cst_14 = arith.constant dense<0.000000e+00> : vector<8x128xf32>
    %19 = tpu.matmul %17, %18, %cst_14 {dimension_numbers = #tpu.dot_dimension_numbers<[1], [0], [0], [1], [0, 0, 1, 1], [], []>} : vector<8x128xbf16>, vector<128x128xbf16>, vector<8x128xf32> -> vector<8x128xf32>
    %c0_15 = arith.constant 0 : index
    %c0_16 = arith.constant 0 : index
    %20 = vector.load %arg7[%c0_15, %c0_16] : memref<1x128xf32, #tpu.memory_space<vmem>>, vector<1x128xf32>
    %21 = vector.broadcast %20 : vector<1x128xf32> to vector<8x128xf32>
    %22 = arith.addf %19, %21 : vector<8x128xf32>
    %23 = vector.extract_strided_slice %22 {offsets = [0, 0], sizes = [8, 8], strides = [1, 1]} : vector<8x128xf32> to vector<8x8xf32>
    %cst_17 = arith.constant dense<0xFF800000> : vector<8xf32>
    %24 = vector.multi_reduction <maximumf>, %23, %cst_17 [1] : vector<8x8xf32> to vector<8xf32>
    %25 = vector.shape_cast %24 : vector<8xf32> to vector<8x1xf32>
    %26 = vector.broadcast %25 : vector<8x1xf32> to vector<8x8xf32>
    %27 = arith.subf %23, %26 : vector<8x8xf32>
    %28 = math.exp %27 : vector<8x8xf32>
    %cst_18 = arith.constant dense<0.000000e+00> : vector<8xf32>
    %29 = vector.multi_reduction <add>, %28, %cst_18 [1] : vector<8x8xf32> to vector<8xf32>
    %30 = vector.shape_cast %29 : vector<8xf32> to vector<8x1xf32>
    %31 = vector.broadcast %30 : vector<8x1xf32> to vector<8x8xf32>
    %32 = arith.divf %28, %31 : vector<8x8xf32>
    %c0_19 = arith.constant 0 : index
    %c0_20 = arith.constant 0 : index
    %33 = vector.load %arg8[%c0_19, %c0_20] : memref<8x8xf32, #tpu.memory_space<vmem>>, vector<8x8xf32>
    tpu.vector_store %arg8[%c0_19, %c0_20], %32 {strides = array<i32>} : memref<8x8xf32, #tpu.memory_space<vmem>>, vector<8x8xf32>,
    return
  }
  func.func @transform_0(%arg0: i32) -> (i32, i32) {
    %c0_i32 = arith.constant 0 : i32
    %c0_i32_0 = arith.constant 0 : i32
    return %arg0, %c0_i32 : i32, i32
  }
  func.func @transform_1(%arg0: i32) -> (i32, i32) {
    %c0_i32 = arith.constant 0 : i32
    %c0_i32_0 = arith.constant 0 : i32
    %c0_i32_1 = arith.constant 0 : i32
    return %c0_i32, %c0_i32_0 : i32, i32
  }
  func.func @transform_2(%arg0: i32) -> (i32, i32) {
    %c0_i32 = arith.constant 0 : i32
    %c0_i32_0 = arith.constant 0 : i32
    %c0_i32_1 = arith.constant 0 : i32
    return %c0_i32, %c0_i32_0 : i32, i32
  }
  func.func @transform_3(%arg0: i32) -> (i32, i32) {
    %c0_i32 = arith.constant 0 : i32
    %c0_i32_0 = arith.constant 0 : i32
    %c0_i32_1 = arith.constant 0 : i32
    return %c0_i32, %c0_i32_0 : i32, i32
  }
  func.func @transform_4(%arg0: i32) -> (i32, i32) {
    %c0_i32 = arith.constant 0 : i32
    %c0_i32_0 = arith.constant 0 : i32
    %c0_i32_1 = arith.constant 0 : i32
    return %c0_i32, %c0_i32_0 : i32, i32
  }
  func.func @transform_5(%arg0: i32) -> (i32, i32) {
    %c0_i32 = arith.constant 0 : i32
    %c0_i32_0 = arith.constant 0 : i32
    %c0_i32_1 = arith.constant 0 : i32
    return %c0_i32, %c0_i32_0 : i32, i32
  }
  func.func @transform_6(%arg0: i32) -> (i32, i32) {
    %c0_i32 = arith.constant 0 : i32
    %c0_i32_0 = arith.constant 0 : i32
    %c0_i32_1 = arith.constant 0 : i32
    return %c0_i32, %c0_i32_0 : i32, i32
  }
  func.func @transform_7(%arg0: i32) -> (i32, i32) {
    %c0_i32 = arith.constant 0 : i32
    %c0_i32_0 = arith.constant 0 : i32
    return %arg0, %c0_i32 : i32, i32
  }
}

</mosaic_0001>

<bundles_post_ra>
// kernel: actor_forward.1
= control target key start
LH: loop header
LB: loop body
LE: loop exit
PB: predicated region body
PF: predicated region fallthrough
CT: control target
= control target key end

     0   :  { %12 = vsyncpa [#allocation3], 0  ;;  %s783_s0 = inlined_call_operand.hbm [shape: f32[8,16], index: 0, kind: input, shape index: {}]   ;;  %s784_s1 = inlined_call_operand.hbm [shape: bf16[16,128], index: 1, kind: input, shape index: {}]   ;;  %s785_s2 = inlined_call_operand.vmem [shape: f32[1,128], index: 2, kind: input, shape index: {}]   ;;  %s786_s3 = inlined_call_operand.hbm [shape: bf16[128,128], index: 3, kind: input, shape index: {}]   ;;  %s787_s4 = inlined_call_operand.vmem [shape: f32[1,128], index: 4, kind: input, shape index: {}]   ;;  %s788_s5 = inlined_call_operand.hbm [shape: bf16[128,128], index: 5, kind: input, shape index: {}]   ;;  %s789_s6 = inlined_call_operand.vmem [shape: f32[1,128], index: 6, kind: input, shape index: {}]   ;;  %s790_s7 = inlined_call_operand.hbm [shape: f32[8,8], index: 7, kind: output, shape index: {}]  }
   0x1   :  { %13 = vsyncpa [#allocation6], 0 }
   0x2   :  { %14 = vsyncpa [#allocation9], 0 }
   0x3   :  { %15 = vsyncpa [#allocation4], 0  ;;  %s633_s24 = smov [#allocation5]   ;;  %s515_s28 = scalar_lea.hbm %s784_s1, 128 }
   0x4   :  { %s31_s25 = sshll.u32 %s633_s24, 4  ;;  %p516_p0 = scmp.ne.s32.totalorder %s784_s1, %s515_s28  ;;  %s32_s25 = int_to_ptr.vmem [resolvable:$true] %s31_s25 }
   0x5   :  { %p519_p1 = scmp.lt.u32.totalorder %s515_s28, %s784_s1 }
   0x7   :  { %p521_p2 = pnand %p519_p1, %p516_p0 }
   0x9   :  { %524 = shalt.err (!%p521_p2)
}
   0xa   :  { %s525_s10 = scalar_lea.vmem %s32_s25, 128  ;;  %p530_p4 = scmp.lt.s32.totalorder %s32_s25, %s32_s25 }
   0xb   :  { %p526_p3 = scmp.ne.s32.totalorder %s32_s25, %s525_s10  ;;  %p531_p5 = scmp.lt.s32.totalorder %s525_s10, %s525_s10 }
   0xd   :  { %p532_p6 = por %p531_p5, %p530_p4 }
   0xf   :  { %p533_p7 = pnand %p532_p6, %p526_p3 }
  0x11   :  { %536 = shalt.err (!%p533_p7)
}
  0x12   :  { %s634_s11 = smov 64   ;;  %s635_s12 = smov 4  }
  0x13   :  { %37 = dma.hbm_to_vmem [thread:$0]  %s784_s1, 128, %s32_s25, [#allocation6], %s634_s11, %s634_s11, %s635_s12  }
  0x14   :  { %s636_s15 = smov [#allocation2]   ;;  %s637_s17 = smov [#allocation7]  }
  0x15   :  { %s22_s16 = sshll.u32 %s636_s15, 4  ;;  %s45_s18 = sshll.u32 %s637_s17, 4  ;;  %s23_s16 = int_to_ptr.vmem [resolvable:$true] %s22_s16  ;;  %s46_s18 = int_to_ptr.vmem [resolvable:$true] %s45_s18 }
  0x16   :  { %s537_s21 = scalar_lea.hbm %s783_s0, 128 }
  0x17   :  { %p538_p8 = scmp.ne.s32.totalorder %s783_s0, %s537_s21  ;;  %p541_p9 = scmp.lt.u32.totalorder %s537_s21, %s783_s0 }
  0x19   :  { %p543_p10 = pnand %p541_p9, %p538_p8 }
  0x1b   :  { %546 = shalt.err (!%p543_p10)
}
  0x1c   :  { %s547_s1 = scalar_lea.vmem %s23_s16, 128  ;;  %p552_p12 = scmp.lt.s32.totalorder %s23_s16, %s23_s16 }
  0x1d   :  { %p548_p11 = scmp.ne.s32.totalorder %s23_s16, %s547_s1  ;;  %p553_p13 = scmp.lt.s32.totalorder %s547_s1, %s547_s1 }
  0x1f   :  { %p554_p0 = por %p553_p13, %p552_p12 }
  0x21   :  { %p555_p1 = pnand %p554_p0, %p548_p11 }
  0x23   :  { %558 = shalt.err (!%p555_p1)
}
  0x24   :  { %25 = dma.hbm_to_vmem [thread:$0]  %s783_s0, 128, %s23_s16, [#allocation3]  }
  0x25   :  { %s559_s30 = scalar_lea.hbm %s786_s3, 1024 }
  0x26   :  { %p560_p2 = scmp.ne.s32.totalorder %s786_s3, %s559_s30  ;;  %p563_p3 = scmp.lt.u32.totalorder %s559_s30, %s786_s3 }
  0x28   :  { %p565_p4 = pnand %p563_p3, %p560_p2 }
  0x2a   :  { %568 = shalt.err (!%p565_p4)
}
  0x2b   :  { %s569_s14 = scalar_lea.vmem %s46_s18, 1024  ;;  %p574_p6 = scmp.lt.s32.totalorder %s46_s18, %s46_s18 }
  0x2c   :  { %p570_p5 = scmp.ne.s32.totalorder %s46_s18, %s569_s14  ;;  %p575_p7 = scmp.lt.s32.totalorder %s569_s14, %s569_s14 }
  0x2e   :  { %p576_p8 = por %p575_p7, %p574_p6 }
  0x30   :  { %p577_p9 = pnand %p576_p8, %p570_p5 }
  0x32   :  { %580 = shalt.err (!%p577_p9)
}
  0x33   :  { %51 = dma.hbm_to_vmem [thread:$0]  %s786_s3, 1024, %s46_s18, [#allocation6], %s634_s11, %s634_s11, %s635_s12  }
  0x34   :  { %s638_s16 = smov [#allocation8]   ;;  %s581_s21 = scalar_lea.hbm %s788_s5, 1024 }
  0x35   :  { %s59_s17 = sshll.u32 %s638_s16, 4  ;;  %p582_p10 = scmp.ne.s32.totalorder %s788_s5, %s581_s21  ;;  %s60_s17 = int_to_ptr.vmem [resolvable:$true] %s59_s17 }
  0x36   :  { %p585_p11 = scmp.lt.u32.totalorder %s581_s21, %s788_s5 }
  0x38   :  { %p587_p12 = pnand %p585_p11, %p582_p10 }
  0x3a   :  { %590 = shalt.err (!%p587_p12)
}
  0x3b   :  { %s591_s1 = scalar_lea.vmem %s60_s17, 1024  ;;  %p596_p0 = scmp.lt.s32.totalorder %s60_s17, %s60_s17 }
  0x3c   :  { %p592_p13 = scmp.ne.s32.totalorder %s60_s17, %s591_s1  ;;  %p597_p1 = scmp.lt.s32.totalorder %s591_s1, %s591_s1 }
  0x3e   :  { %p598_p2 = por %p597_p1, %p596_p0 }
  0x40   :  { %p599_p3 = pnand %p598_p2, %p592_p13 }
  0x42   :  { %602 = shalt.err (!%p599_p3)
}
  0x43   :  { %65 = dma.hbm_to_vmem [thread:$0]  %s788_s5, 1024, %s60_s17, [#allocation9], %s634_s11, %s634_s11, %s635_s12  }
  0x44   :  { %625 = dma.done.wait [#allocation3], 128  }
  0x45   :  { %626 = vsyncadd [#allocation3], 4294967168 }
  0x46   :  { %627 = dma.done.wait [#allocation6], 1152  }
  0x47   :  { %628 = vsyncadd [#allocation6], 4294966144 }
  0x48   :  { %629 = dma.done.wait [#allocation9], 1024  }
  0x49   :  { %630 = vsyncadd [#allocation9], 4294966272  ;;  %v639_v0 = vmov 0.0   ;;  %vm640_vm0 = vmmov 0   ;;  %v494_v1 = vld [vmem:[#allocation5] sm:$0xff]   ;;  %v81_v2 = vld [vmem:[#allocation2] sm:$0xff] }
  0x4a   :  { %439 = vmatprep.subr.bf16.mxu0 %v639_v0  ;;  %441 = vmatprep.mubr.msk.bf16.mxu0 %vm640_vm0, %v639_v0  ;;  %v82_v3 = vpack.c.bf16 %v81_v2, %v81_v2  ;;  %vm98_vm1 = vcmask 130048   ;;  %v495_v4 = vld [vmem:[#allocation7] sm:$0xff]   ;;  %v496_v5 = vld [vmem:[#allocation7 + $0x8] sm:$0xff]   ;;  %v497_v6 = vld [vmem:[#allocation7 + $0x10] sm:$0xff]   ;;  %vm368_vm2 = vcmask 64512  }
  0x4b   :  { %445 = vmatprep.subr.bf16.mxu1 %v639_v0  ;;  %461 = vmatprep.mubr.msk.bf16.mxu1 %vm640_vm0, %v639_v0  ;;  %v498_v7 = vld [vmem:[#allocation7 + $0x18] sm:$0xff]   ;;  %v499_v8 = vld [vmem:[#allocation7 + $0x20] sm:$0xff]   ;;  %v500_v9 = vld [vmem:[#allocation7 + $0x28] sm:$0xff]  }
  0x4c   :  { %440 = vmatpush3.bf16.msra.mxu0 %v494_v1  ;;  %446 = vmatpush3.bf16.msra.mxu1 %v495_v4  ;;  %v501_v10 = vld [vmem:[#allocation7 + $0x30] sm:$0xff]   ;;  %v502_v11 = vld [vmem:[#allocation7 + $0x38] sm:$0xff]   ;;  %v503_v12 = vld [vmem:[#allocation8] sm:$0xff]  }
  0x4d   :  { %465 = vmatprep.subr.bf16.mxu0 %v639_v0  ;;  %447 = vmatprep.subr.bf16.mxu1 %v639_v0  ;;  %v504_v13 = vld [vmem:[#allocation8 + $0x8] sm:$0xff]   ;;  %v505_v14 = vld [vmem:[#allocation8 + $0x10] sm:$0xff]   ;;  %v506_v15 = vld [vmem:[#allocation8 + $0x18] sm:$0xff]  }
  0x4e   :  { %v507_v16 = vld [vmem:[#allocation8 + $0x20] sm:$0xff]   ;;  %v508_v17 = vld [vmem:[#allocation8 + $0x28] sm:$0xff]   ;;  %v398_v18 = vld [vmem:[%s785_s2] ss:$0 sm:$0xff] }
  0x4f   :  { %442 = vmatmul.mubr.msk.bf16.vlgmr.msra.gmra.mrb[0].mxu0 %vm98_vm1, %v82_v3  ;;  %v509_v26 = vld [vmem:[#allocation8 + $0x30] sm:$0xff]   ;;  %v510_v27 = vld [vmem:[#allocation8 + $0x38] sm:$0xff]  }
  0x50   :  { %481 = vmatprep.mubr.msk.bf16.mxu0 %vm640_vm0, %v639_v0  ;;  %448 = vmatpush3.bf16.msra.mxu1 %v496_v5  ;;  %v401_v28 = vld [vmem:[%s787_s4] ss:$0 sm:$0xff]  ;;  %s641_s4 = smov [#allocation10]  }
  0x51   :  { %449 = vmatprep.subr.bf16.mxu1 %v639_v0  ;;  %466 = vmatpush3.bf16.msra.mxu0 %v503_v12  ;;  %v410_v36 = vld [vmem:[%s789_s6] ss:$0 sm:$0xff]  ;;  %s387_s6 = sshll.u32 %s641_s4, 4  ;;  %s388_s6 = int_to_ptr.vmem [resolvable:$true] %s387_s6 }
  0x52   :  { %467 = vmatprep.subr.bf16.mxu0 %v639_v0  ;;  %s603_s28 = scalar_lea.vmem %s388_s6, 128  ;;  %p608_p5 = scmp.lt.s32.totalorder %s388_s6, %s388_s6 }
  0x53   :  { %p604_p4 = scmp.ne.s32.totalorder %s388_s6, %s603_s28  ;;  %p609_p6 = scmp.lt.s32.totalorder %s603_s28, %s603_s28 }
  0x54   :  { %450 = vmatpush3.bf16.msra.mxu1 %v497_v6 }
  0x55   :  { %451 = vmatprep.subr.bf16.mxu1 %v639_v0  ;;  %468 = vmatpush3.bf16.msra.mxu0 %v504_v13  ;;  %p610_p7 = por %p609_p6, %p608_p5 }
  0x56   :  { %469 = vmatprep.subr.bf16.mxu0 %v639_v0 }
  0x57   :  { %p611_p8 = pnand %p610_p7, %p604_p4 }
  0x58   :  { %452 = vmatpush3.bf16.msra.mxu1 %v498_v7 }
  0x59   :  { %453 = vmatprep.subr.bf16.mxu1 %v639_v0  ;;  %470 = vmatpush3.bf16.msra.mxu0 %v505_v14 }
  0x5a   :  { %471 = vmatprep.subr.bf16.mxu0 %v639_v0 }
  0x5c   :  { %454 = vmatpush3.bf16.msra.mxu1 %v499_v8 }
  0x5d   :  { %455 = vmatprep.subr.bf16.mxu1 %v639_v0  ;;  %472 = vmatpush3.bf16.msra.mxu0 %v506_v15 }
  0x5e   :  { %473 = vmatprep.subr.bf16.mxu0 %v639_v0 }
  0x60   :  { %456 = vmatpush3.bf16.msra.mxu1 %v500_v9 }
  0x61   :  { %457 = vmatprep.subr.bf16.mxu1 %v639_v0  ;;  %474 = vmatpush3.bf16.msra.mxu0 %v507_v16 }
  0x62   :  { %475 = vmatprep.subr.bf16.mxu0 %v639_v0 }
  0x64   :  { %458 = vmatpush3.bf16.msra.mxu1 %v501_v10 }
  0x65   :  { %459 = vmatprep.subr.bf16.mxu1 %v639_v0  ;;  %476 = vmatpush3.bf16.msra.mxu0 %v508_v17 }
  0x66   :  { %477 = vmatprep.subr.bf16.mxu0 %v639_v0 }
  0x68   :  { %460 = vmatpush3.bf16.msra.mxu1 %v502_v11 }
  0x69   :  { %478 = vmatpush3.bf16.msra.mxu0 %v509_v26 }
  0x6a   :  { %479 = vmatprep.subr.bf16.mxu0 %v639_v0 }
  0x6d   :  { %480 = vmatpush3.bf16.msra.mxu0 %v510_v27 }
 0x122   :  { %v136_v19 = vpop.f32.mrb[0].mxu0 }
 0x123   :  { %v137_v20 = vadd.f32 %v398_v18, %v136_v19  ;;  %v443_v21 = vpop.f32.mrb[1].mxu0 }
 0x124   :  { %v139_v22 = vpop.f32.mrb[2].mxu0 }
 0x125   :  { %v142_v23 = vmax.f32 %v137_v20, 0.0  ;;  %v444_v24 = vpop.f32.mrb[3].mxu0 }
 0x127   :  { %v143_v25 = vpack.c.bf16 %v142_v23, %v142_v23 }
 0x129   :  { %462 = vmatmul.mubr.bf16.vlgmr.msra.gmra.mrb[0].mxu1 %v143_v25 }
 0x1fc   :  { %v249_v29 = vpop.f32.mrb[0].mxu1 }
 0x1fd   :  { %v250_v30 = vadd.f32 %v401_v28, %v249_v29  ;;  %v463_v31 = vpop.f32.mrb[1].mxu1 }
 0x1fe   :  { %v252_v32 = vpop.f32.mrb[2].mxu1 }
 0x1ff   :  { %v255_v33 = vmax.f32 %v250_v30, 0.0  ;;  %v464_v34 = vpop.f32.mrb[3].mxu1 }
 0x201   :  { %v256_v35 = vpack.c.bf16 %v255_v33, %v255_v33 }
 0x203   :  { %482 = vmatmul.mubr.bf16.vlgmr.msra.gmra.mrb[4].mxu0 %v256_v35 }
 0x2d6   :  { %v362_v37 = vpop.f32.mrb[4].mxu0 }
 0x2d7   :  { %v363_v38 = vadd.f32 %v410_v36, %v362_v37  ;;  %v483_v39 = vpop.f32.mrb[5].mxu0 }
 0x2d8   :  { %v365_v40 = vpop.f32.mrb[6].mxu0 }
 0x2d9   :  { %v484_v41 = vpop.f32.mrb[7].mxu0  ;;  %v369_v42 = vsel %vm368_vm2, %v363_v38, -inf }
 0x2da   :  { %370 = vmax.xlane.f32.xlu0 %v369_v42 }
 0x367   :  { %v371_v43 = vpop.xlane.xlu0 %370 }
 0x368   :  { %v372_v44 = vsub.f32 %v363_v38, %v371_v43 }
 0x36a   :  { %v373_v45 = vmul.f32 1.442695, %v372_v44 }
 0x36c   :  { %511 = vpow2.f32 %v373_v45 }
 0x376   :  { %v512_v46 = vpop.eup %511 }
 0x377   :  { %v375_v47 = vsel %vm368_vm2, %v512_v46, 0.0 }
 0x378   :  { %376 = vadd.xlane.f32.xlu0 %v375_v47 }
 0x405   :  { %v377_v48 = vpop.xlane.xlu0 %376 }
 0x406   :  { %513 = vrcp.f32 %v377_v48 }
 0x410   :  { %v514_v49 = vpop.eup %513 }
 0x411   :  { %v379_v50 = vmul.f32 %v514_v49, %v512_v46 }
 0x413   :  { %380 = vst.msk [vmem:[#allocation10] sm:$0xff] %vm368_vm2, %v379_v50 }
 0x414   :  { %614 = shalt.err (!%p611_p8)
}
 0x415   :  { %s615_s8 = scalar_lea.hbm %s790_s7, 128 }
 0x416   :  { %p616_p9 = scmp.ne.s32.totalorder %s790_s7, %s615_s8  ;;  %p619_p10 = scmp.lt.u32.totalorder %s615_s8, %s790_s7 }
 0x418   :  { %p621_p11 = pnand %p619_p10, %p616_p9 }
 0x41a   :  { %624 = shalt.err (!%p621_p11)
}
 0x41b   :  { %390 = dma.vmem_to_hbm [thread:$0]  %s388_s6, 128, %s790_s7, [#allocation4]  }
 0x41c   :  { %631 = dma.done.wait [#allocation4], 128  }
 0x41d   :  { %632 = vsyncadd [#allocation4], 4294967168 }
 0x41e   :  { %394 = vsyncpa [#allocation3], 1 }
 0x41f   :  { %395 = vsyncpa [#allocation6], 1 }
 0x420   :  { %396 = vsyncpa [#allocation9], 1 }
 0x421   :  { %397 = vsyncpa [#allocation4], 1 }

</bundles_post_ra>
